<compile_context>
chip_gen: v5e
topology: v5e:2x2
jax: 0.10.0
libtpu: 0.0.40
codegen_flags: <defaults>
</compile_context>

<pallas_src>
import functools
import itertools

import jax
import jax.numpy as jnp
from jax.experimental import pallas as pl
from jax.experimental.pallas import tpu as pltpu


def _tta_kernel(x_ref, w_ref, pos_ref, bias_ref, out_ref, rep_ref, *,
                n_flip, n_affine, batch, n_out_ch, mul_half, mul_idx, merge_scale):
    """One grid step = one spatial (lane) tile; all flip x affine passes in-body.

    x_ref    : VMEM (B*C,  T)            input tile (batch folded into sublanes)
    w_ref    : VMEM (B*Co, B*C)          block-diagonal 1x1-conv weight
    pos_ref  : VMEM (n_flip, Co, T)      0.5 * flip-variants of positional bias (no batch dup)
    bias_ref : VMEM (n_affine, B*Co, 1)  0.5 * add_j * mul_j * rowsum(W), batch-tiled channels
    out_ref  : VMEM (B*Co, T)            mean-of-sigmoids output, written once
    rep_ref  : VMEM (n_flip, B*Co, T)    scratch: pos replicated across the batch fold
    """
    # 1x1 conv once per tile (MXU).
    # TODO(synk): for large channel counts put the spatial tile on the MXU M axis
    # ((T, B*C) @ (B*C, B*Co)); at C=Co=4 the matmul cost is negligible either way.
    z = jnp.dot(w_ref[...], x_ref[...], preferred_element_type=jnp.float32)   # (B*Co, T)

    # Replicate the de-duplicated per-channel positional bias across the batch fold once
    # per tile (cheap static sublane stores; halves pos HBM traffic at B=2).
    for f in range(n_flip):
        pf = pos_ref[f]                                                       # (Co, T)
        for b in range(batch):
            rep_ref[f, pl.ds(b * n_out_ch, n_out_ch), :] = pf

    # Hoist the (0.5*mul_k)*z products: only len(mul_half) distinct mul values exist.
    zm = [mh * z for mh in mul_half]
    biases = [bias_ref[j] for j in range(n_affine)]                           # (B*Co, 1) each

    # 24 cheap passes: 2 adds + 1 accumulate (VALU) + 1 tanh (EUP) per element per pass.
    # sigmoid(v) = 0.5 + 0.5*tanh(v/2)  =>  accumulate tanh of the pre-halved logit.
    acc = jnp.zeros_like(z)
    for f in range(n_flip):
        posf = rep_ref[f]                                                     # (B*Co, T)
        for j in range(n_affine):
            v = zm[mul_idx[j]] + posf + biases[j]                             # = 0.5 * logit
            acc = acc + jnp.tanh(v)
    out_ref[...] = 0.5 + merge_scale * acc                                    # merge='mean'


def tta_forward(x_nchw, w, pos, add_params, mul_params):
    """x_nchw: (B, C, H, W) f32; w: (Co, C) f32; pos: (Co, H, W) f32;
    add_params / mul_params: static TTA config lists (identity values included)."""
    B, C, H, W = x_nchw.shape
    Co = w.shape[0]
    HW = H * W
    n_flip = 4

    affine_pairs = list(itertools.product(add_params, mul_params))
    n_affine = len(affine_pairs)
    n_t = n_flip * n_affine
    mul_half = tuple(0.5 * float(m) for m in mul_params)
    mul_idx = tuple(mul_params.index(m) for (_a, m) in affine_pairs)

    # Lane tiling: pad HW to a multiple of 128; 512-lane tiles for large HW (even n_hw for
    # v7x megacore sharding), single whole tile for small problems (toy shape -> grid=(1,)).
    hw128 = ((HW + 127) // 128) * 128
    if hw128 <= 512:
        tile_hw = hw128
        hw_pad = hw128
    else:
        tile_hw = 512
        hw_pad = -(-HW // (2 * tile_hw)) * (2 * tile_hw)
    n_hw = hw_pad // tile_hw

    # Fold batch into the sublane axis.
    x_f = x_nchw.reshape(B * C, HW)
    if hw_pad != HW:
        x_f = jnp.pad(x_f, ((0, 0), (0, hw_pad - HW)))
    wblk = jnp.kron(jnp.eye(B, dtype=w.dtype), w)                 # (B*Co, B*C) block-diag

    # 4 flip variants of the positional bias, pre-halved for the tanh form, NOT batch-tiled.
    pos_variants = jnp.stack(
        [pos,                     # hf=0, vf=0
         pos[:, :, ::-1],         # hf=1            (flip W)
         pos[:, ::-1, :],         # vf=1            (flip H)
         pos[:, ::-1, ::-1]],     # hf=1, vf=1
        axis=0)
    half_pos = (0.5 * pos_variants).reshape(n_flip, Co, HW)
    if hw_pad != HW:
        half_pos = jnp.pad(half_pos, ((0, 0), (0, 0), (0, hw_pad - HW)))

    # Per-pass channel bias: 0.5 * add_j * mul_j * rowsum(W), tiled across the batch fold.
    rw_b = jnp.tile(jnp.sum(w, axis=1), (B,))                                 # (B*Co,)
    am = jnp.array([0.5 * a * m for (a, m) in affine_pairs], jnp.float32)     # (n_affine,)
    half_bias = am[:, None, None] * rw_b[None, :, None]                       # (n_affine, B*Co, 1)

    kernel = functools.partial(
        _tta_kernel, n_flip=n_flip, n_affine=n_affine, batch=B, n_out_ch=Co,
        mul_half=mul_half, mul_idx=mul_idx, merge_scale=0.5 / n_t)

    out_f = pl.pallas_call(
        kernel,
        out_shape=jax.ShapeDtypeStruct((B * Co, hw_pad), jnp.float32),
        grid_spec=pltpu.PrefetchScalarGridSpec(
            num_scalar_prefetch=0,
            grid=(n_hw,),                                                     # parallel hw axis
            in_specs=[
                pl.BlockSpec((B * C, tile_hw), lambda i: (0, i)),             # input tile
                pl.BlockSpec((B * Co, B * C), lambda i: (0, 0)),              # conv weight
                pl.BlockSpec((n_flip, Co, tile_hw), lambda i: (0, 0, i)),     # half pos (4 flips)
                pl.BlockSpec((n_affine, B * Co, 1), lambda i: (0, 0, 0)),     # per-pass bias
            ],
            out_specs=pl.BlockSpec((B * Co, tile_hw), lambda i: (0, i)),
            scratch_shapes=[pltpu.VMEM((n_flip, B * Co, tile_hw), jnp.float32)],
        ),
        compiler_params=pltpu.CompilerParams(
            dimension_semantics=("parallel",)),
    )(x_f, wblk, half_pos, half_bias)

    return out_f[:, :HW].reshape(B, Co, H, W)


def tta_reference(x, w, pos, configs):
    """Pure-JAX mirror of the PyTorch TTA forward (exact elementwise math)."""
    outs = []
    for hf, vf, a, m in configs:
        b = x
        if hf:
            b = b[:, :, :, ::-1]   # h_flip = flip width
        if vf:
            b = b[:, :, ::-1, :]   # v_flip = flip height
        b = (b + a) * m
        y = jnp.sum(w[None, :, :, None, None] * b[:, None, :, :, :], axis=2)  # (B,Co,H,W)
        y = y + pos[None]
        # segm backward (reversed order; add/mul are identity on backward)
        if vf:
            y = y[:, :, ::-1, :]
        if hf:
            y = y[:, :, :, ::-1]
        outs.append(y)
    stacked = jnp.stack(outs, axis=0)          # (N, B, Co, H, W)
    probs = jax.nn.sigmoid(stacked)            # activation='sigmoid'
    return jnp.mean(probs, axis=0)             # merge='mean'


if __name__ == "__main__":
    key = jax.random.PRNGKey(0)
    kx, kw, kp = jax.random.split(key, 3)

    B, C, H, W = 2, 4, 16, 16
    Co = 4

    x = jax.random.normal(kx, (B, C, H, W), dtype=jnp.float32)
    w = 0.5 * jax.random.normal(kw, (Co, C), dtype=jnp.float32)
    pos = 0.1 * jax.random.normal(kp, (Co, H, W), dtype=jnp.float32)

    # Augmentation(h_flip=True, v_flip=True, add=[0.05], mul=[0.9, 1.1]) prepared params:
    hf_params = [0, 1]            # [False, True]
    vf_params = [0, 1]            # [False, True]
    add_params = [0.0, 0.05]      # identity prepended
    mul_params = [1.0, 0.9, 1.1]  # identity prepended
    # rotation / shifts prepare to a single identity value -> drop from the product
    configs = list(itertools.product(hf_params, vf_params, add_params, mul_params))  # 24

    out = jax.block_until_ready(tta_forward(x, w, pos, add_params, mul_params))
    ref = jax.block_until_ready(tta_reference(x, w, pos, configs))

    assert out.shape == (B, Co, H, W), out.shape
    err = float(jnp.max(jnp.abs(out - ref)))
    # Exact f32 sigmoid via tanh (no approx reciprocal any more) -> tight tolerance.
    assert err < 1e-4, f"max abs err {err}"
    print("KERNEL_OK")
</pallas_src>

<mosaic_0001>
module attributes {stable_mosaic.version = 11 : i64} {
  func.func @_tta_kernel(%arg0: i32, %arg1: memref<8x256xf32, #tpu.memory_space<vmem>>, %arg2: memref<8x8xf32, #tpu.memory_space<vmem>>, %arg3: memref<4x4x256xf32, #tpu.memory_space<vmem>>, %arg4: memref<6x8x1xf32, #tpu.memory_space<vmem>>, %arg5: memref<8x256xf32, #tpu.memory_space<vmem>>, %arg6: memref<4x8x256xf32, #tpu.memory_space<vmem>>) attributes {dimension_semantics = [#tpu.dimension_semantics<parallel>], iteration_bounds = array<i64: 1>, scalar_prefetch = 0 : i64, scratch_operands = 1 : i64, tpu.core_type = #tpu.core_type<tc>, window_params = [{transform_indices = @transform_0, window_bounds = array<i64: 8, 256>}, {pipeline_mode = #tpu.pipeline_mode<synchronous>, transform_indices = @transform_1, window_bounds = array<i64: 8, 8>}, {transform_indices = @transform_2, window_bounds = array<i64: 4, 4, 256>}, {pipeline_mode = #tpu.pipeline_mode<synchronous>, transform_indices = @transform_3, window_bounds = array<i64: 6, 8, 1>}, {transform_indices = @transform_4, window_bounds = array<i64: 8, 256>}]} {
    %c0 = arith.constant 0 : index
    %c0_0 = arith.constant 0 : index
    %0 = vector.load %arg2[%c0, %c0_0] : memref<8x8xf32, #tpu.memory_space<vmem>>, vector<8x8xf32>
    %c0_1 = arith.constant 0 : index
    %c0_2 = arith.constant 0 : index
    %1 = vector.load %arg1[%c0_1, %c0_2] : memref<8x256xf32, #tpu.memory_space<vmem>>, vector<8x256xf32>
    %cst = arith.constant dense<0.000000e+00> : vector<8x256xf32>
    %2 = tpu.matmul %0, %1, %cst {dimension_numbers = #tpu.dot_dimension_numbers<[1], [0], [0], [1], [0, 0, 1, 1], [], []>} : vector<8x8xf32>, vector<8x256xf32>, vector<8x256xf32> -> vector<8x256xf32>
    %c0_3 = arith.constant 0 : index
    %c0_4 = arith.constant 0 : index
    %c0_5 = arith.constant 0 : index
    %3 = vector.load %arg3[%c0_3, %c0_4, %c0_5] : memref<4x4x256xf32, #tpu.memory_space<vmem>>, vector<1x4x256xf32>
    %4 = vector.shape_cast %3 : vector<1x4x256xf32> to vector<4x256xf32>
    %c0_6 = arith.constant 0 : index
    %c0_7 = arith.constant 0 : index
    %c0_8 = arith.constant 0 : index
    %5 = vector.load %arg6[%c0_6, %c0_7, %c0_8] : memref<4x8x256xf32, #tpu.memory_space<vmem>>, vector<1x4x256xf32>
    %6 = vector.shape_cast %5 : vector<1x4x256xf32> to vector<4x256xf32>
    %7 = vector.shape_cast %4 : vector<4x256xf32> to vector<1x4x256xf32>
    tpu.vector_store %arg6[%c0_6, %c0_7, %c0_8], %7 {strides = array<i32>} : memref<4x8x256xf32, #tpu.memory_space<vmem>>, vector<1x4x256xf32>,
    %c0_9 = arith.constant 0 : index
    %c4 = arith.constant 4 : index
    %c0_10 = arith.constant 0 : index
    %8 = vector.load %arg6[%c0_9, %c4, %c0_10] : memref<4x8x256xf32, #tpu.memory_space<vmem>>, vector<1x4x256xf32>
    %9 = vector.shape_cast %8 : vector<1x4x256xf32> to vector<4x256xf32>
    %10 = vector.shape_cast %4 : vector<4x256xf32> to vector<1x4x256xf32>
    tpu.vector_store %arg6[%c0_9, %c4, %c0_10], %10 {strides = array<i32>} : memref<4x8x256xf32, #tpu.memory_space<vmem>>, vector<1x4x256xf32>,
    %c1 = arith.constant 1 : index
    %c0_11 = arith.constant 0 : index
    %c0_12 = arith.constant 0 : index
    %11 = vector.load %arg3[%c1, %c0_11, %c0_12] : memref<4x4x256xf32, #tpu.memory_space<vmem>>, vector<1x4x256xf32>
    %12 = vector.shape_cast %11 : vector<1x4x256xf32> to vector<4x256xf32>
    %c1_13 = arith.constant 1 : index
    %c0_14 = arith.constant 0 : index
    %c0_15 = arith.constant 0 : index
    %13 = vector.load %arg6[%c1_13, %c0_14, %c0_15] : memref<4x8x256xf32, #tpu.memory_space<vmem>>, vector<1x4x256xf32>
    %14 = vector.shape_cast %13 : vector<1x4x256xf32> to vector<4x256xf32>
    %15 = vector.shape_cast %12 : vector<4x256xf32> to vector<1x4x256xf32>
    tpu.vector_store %arg6[%c1_13, %c0_14, %c0_15], %15 {strides = array<i32>} : memref<4x8x256xf32, #tpu.memory_space<vmem>>, vector<1x4x256xf32>,
    %c1_16 = arith.constant 1 : index
    %c4_17 = arith.constant 4 : index
    %c0_18 = arith.constant 0 : index
    %16 = vector.load %arg6[%c1_16, %c4_17, %c0_18] : memref<4x8x256xf32, #tpu.memory_space<vmem>>, vector<1x4x256xf32>
    %17 = vector.shape_cast %16 : vector<1x4x256xf32> to vector<4x256xf32>
    %18 = vector.shape_cast %12 : vector<4x256xf32> to vector<1x4x256xf32>
    tpu.vector_store %arg6[%c1_16, %c4_17, %c0_18], %18 {strides = array<i32>} : memref<4x8x256xf32, #tpu.memory_space<vmem>>, vector<1x4x256xf32>,
    %c2 = arith.constant 2 : index
    %c0_19 = arith.constant 0 : index
    %c0_20 = arith.constant 0 : index
    %19 = vector.load %arg3[%c2, %c0_19, %c0_20] : memref<4x4x256xf32, #tpu.memory_space<vmem>>, vector<1x4x256xf32>
    %20 = vector.shape_cast %19 : vector<1x4x256xf32> to vector<4x256xf32>
    %c2_21 = arith.constant 2 : index
    %c0_22 = arith.constant 0 : index
    %c0_23 = arith.constant 0 : index
    %21 = vector.load %arg6[%c2_21, %c0_22, %c0_23] : memref<4x8x256xf32, #tpu.memory_space<vmem>>, vector<1x4x256xf32>
    %22 = vector.shape_cast %21 : vector<1x4x256xf32> to vector<4x256xf32>
    %23 = vector.shape_cast %20 : vector<4x256xf32> to vector<1x4x256xf32>
    tpu.vector_store %arg6[%c2_21, %c0_22, %c0_23], %23 {strides = array<i32>} : memref<4x8x256xf32, #tpu.memory_space<vmem>>, vector<1x4x256xf32>,
    %c2_24 = arith.constant 2 : index
    %c4_25 = arith.constant 4 : index
    %c0_26 = arith.constant 0 : index
    %24 = vector.load %arg6[%c2_24, %c4_25, %c0_26] : memref<4x8x256xf32, #tpu.memory_space<vmem>>, vector<1x4x256xf32>
    %25 = vector.shape_cast %24 : vector<1x4x256xf32> to vector<4x256xf32>
    %26 = vector.shape_cast %20 : vector<4x256xf32> to vector<1x4x256xf32>
    tpu.vector_store %arg6[%c2_24, %c4_25, %c0_26], %26 {strides = array<i32>} : memref<4x8x256xf32, #tpu.memory_space<vmem>>, vector<1x4x256xf32>,
    %c3 = arith.constant 3 : index
    %c0_27 = arith.constant 0 : index
    %c0_28 = arith.constant 0 : index
    %27 = vector.load %arg3[%c3, %c0_27, %c0_28] : memref<4x4x256xf32, #tpu.memory_space<vmem>>, vector<1x4x256xf32>
    %28 = vector.shape_cast %27 : vector<1x4x256xf32> to vector<4x256xf32>
    %c3_29 = arith.constant 3 : index
    %c0_30 = arith.constant 0 : index
    %c0_31 = arith.constant 0 : index
    %29 = vector.load %arg6[%c3_29, %c0_30, %c0_31] : memref<4x8x256xf32, #tpu.memory_space<vmem>>, vector<1x4x256xf32>
    %30 = vector.shape_cast %29 : vector<1x4x256xf32> to vector<4x256xf32>
    %31 = vector.shape_cast %28 : vector<4x256xf32> to vector<1x4x256xf32>
    tpu.vector_store %arg6[%c3_29, %c0_30, %c0_31], %31 {strides = array<i32>} : memref<4x8x256xf32, #tpu.memory_space<vmem>>, vector<1x4x256xf32>,
    %c3_32 = arith.constant 3 : index
    %c4_33 = arith.constant 4 : index
    %c0_34 = arith.constant 0 : index
    %32 = vector.load %arg6[%c3_32, %c4_33, %c0_34] : memref<4x8x256xf32, #tpu.memory_space<vmem>>, vector<1x4x256xf32>
    %33 = vector.shape_cast %32 : vector<1x4x256xf32> to vector<4x256xf32>
    %34 = vector.shape_cast %28 : vector<4x256xf32> to vector<1x4x256xf32>
    tpu.vector_store %arg6[%c3_32, %c4_33, %c0_34], %34 {strides = array<i32>} : memref<4x8x256xf32, #tpu.memory_space<vmem>>, vector<1x4x256xf32>,
    %cst_35 = arith.constant 5.000000e-01 : f32
    %35 = vector.broadcast %cst_35 : f32 to vector<8x256xf32>
    %36 = arith.mulf %35, %2 : vector<8x256xf32>
    %cst_36 = arith.constant 4.500000e-01 : f32
    %37 = vector.broadcast %cst_36 : f32 to vector<8x256xf32>
    %38 = arith.mulf %37, %2 : vector<8x256xf32>
    %cst_37 = arith.constant 5.500000e-01 : f32
    %39 = vector.broadcast %cst_37 : f32 to vector<8x256xf32>
    %40 = arith.mulf %39, %2 : vector<8x256xf32>
    %c0_38 = arith.constant 0 : index
    %c0_39 = arith.constant 0 : index
    %c0_40 = arith.constant 0 : index
    %41 = vector.load %arg4[%c0_38, %c0_39, %c0_40] : memref<6x8x1xf32, #tpu.memory_space<vmem>>, vector<1x8x1xf32>
    %42 = vector.shape_cast %41 : vector<1x8x1xf32> to vector<8x1xf32>
    %c1_41 = arith.constant 1 : index
    %c0_42 = arith.constant 0 : index
    %c0_43 = arith.constant 0 : index
    %43 = vector.load %arg4[%c1_41, %c0_42, %c0_43] : memref<6x8x1xf32, #tpu.memory_space<vmem>>, vector<1x8x1xf32>
    %44 = vector.shape_cast %43 : vector<1x8x1xf32> to vector<8x1xf32>
    %c2_44 = arith.constant 2 : index
    %c0_45 = arith.constant 0 : index
    %c0_46 = arith.constant 0 : index
    %45 = vector.load %arg4[%c2_44, %c0_45, %c0_46] : memref<6x8x1xf32, #tpu.memory_space<vmem>>, vector<1x8x1xf32>
    %46 = vector.shape_cast %45 : vector<1x8x1xf32> to vector<8x1xf32>
    %c3_47 = arith.constant 3 : index
    %c0_48 = arith.constant 0 : index
    %c0_49 = arith.constant 0 : index
    %47 = vector.load %arg4[%c3_47, %c0_48, %c0_49] : memref<6x8x1xf32, #tpu.memory_space<vmem>>, vector<1x8x1xf32>
    %48 = vector.shape_cast %47 : vector<1x8x1xf32> to vector<8x1xf32>
    %c4_50 = arith.constant 4 : index
    %c0_51 = arith.constant 0 : index
    %c0_52 = arith.constant 0 : index
    %49 = vector.load %arg4[%c4_50, %c0_51, %c0_52] : memref<6x8x1xf32, #tpu.memory_space<vmem>>, vector<1x8x1xf32>
    %50 = vector.shape_cast %49 : vector<1x8x1xf32> to vector<8x1xf32>
    %c5 = arith.constant 5 : index
    %c0_53 = arith.constant 0 : index
    %c0_54 = arith.constant 0 : index
    %51 = vector.load %arg4[%c5, %c0_53, %c0_54] : memref<6x8x1xf32, #tpu.memory_space<vmem>>, vector<1x8x1xf32>
    %52 = vector.shape_cast %51 : vector<1x8x1xf32> to vector<8x1xf32>
    %cst_55 = arith.constant 0.000000e+00 : f32
    %53 = vector.broadcast %cst_55 : f32 to vector<8x256xf32>
    %c0_56 = arith.constant 0 : index
    %c0_57 = arith.constant 0 : index
    %c0_58 = arith.constant 0 : index
    %54 = vector.load %arg6[%c0_56, %c0_57, %c0_58] : memref<4x8x256xf32, #tpu.memory_space<vmem>>, vector<1x8x256xf32>
    %55 = vector.shape_cast %54 : vector<1x8x256xf32> to vector<8x256xf32>
    %56 = arith.addf %36, %55 : vector<8x256xf32>
    %57 = vector.broadcast %42 : vector<8x1xf32> to vector<8x256xf32>
    %58 = arith.addf %56, %57 : vector<8x256xf32>
    %59 = math.tanh %58 : vector<8x256xf32>
    %60 = arith.addf %53, %59 : vector<8x256xf32>
    %61 = arith.addf %38, %55 : vector<8x256xf32>
    %62 = vector.broadcast %44 : vector<8x1xf32> to vector<8x256xf32>
    %63 = arith.addf %61, %62 : vector<8x256xf32>
    %64 = math.tanh %63 : vector<8x256xf32>
    %65 = arith.addf %60, %64 : vector<8x256xf32>
    %66 = arith.addf %40, %55 : vector<8x256xf32>
    %67 = vector.broadcast %46 : vector<8x1xf32> to vector<8x256xf32>
    %68 = arith.addf %66, %67 : vector<8x256xf32>
    %69 = math.tanh %68 : vector<8x256xf32>
    %70 = arith.addf %65, %69 : vector<8x256xf32>
    %71 = arith.addf %36, %55 : vector<8x256xf32>
    %72 = vector.broadcast %48 : vector<8x1xf32> to vector<8x256xf32>
    %73 = arith.addf %71, %72 : vector<8x256xf32>
    %74 = math.tanh %73 : vector<8x256xf32>
    %75 = arith.addf %70, %74 : vector<8x256xf32>
    %76 = arith.addf %38, %55 : vector<8x256xf32>
    %77 = vector.broadcast %50 : vector<8x1xf32> to vector<8x256xf32>
    %78 = arith.addf %76, %77 : vector<8x256xf32>
    %79 = math.tanh %78 : vector<8x256xf32>
    %80 = arith.addf %75, %79 : vector<8x256xf32>
    %81 = arith.addf %40, %55 : vector<8x256xf32>
    %82 = vector.broadcast %52 : vector<8x1xf32> to vector<8x256xf32>
    %83 = arith.addf %81, %82 : vector<8x256xf32>
    %84 = math.tanh %83 : vector<8x256xf32>
    %85 = arith.addf %80, %84 : vector<8x256xf32>
    %c1_59 = arith.constant 1 : index
    %c0_60 = arith.constant 0 : index
    %c0_61 = arith.constant 0 : index
    %86 = vector.load %arg6[%c1_59, %c0_60, %c0_61] : memref<4x8x256xf32, #tpu.memory_space<vmem>>, vector<1x8x256xf32>
    %87 = vector.shape_cast %86 : vector<1x8x256xf32> to vector<8x256xf32>
    %88 = arith.addf %36, %87 : vector<8x256xf32>
    %89 = vector.broadcast %42 : vector<8x1xf32> to vector<8x256xf32>
    %90 = arith.addf %88, %89 : vector<8x256xf32>
    %91 = math.tanh %90 : vector<8x256xf32>
    %92 = arith.addf %85, %91 : vector<8x256xf32>
    %93 = arith.addf %38, %87 : vector<8x256xf32>
    %94 = vector.broadcast %44 : vector<8x1xf32> to vector<8x256xf32>
    %95 = arith.addf %93, %94 : vector<8x256xf32>
    %96 = math.tanh %95 : vector<8x256xf32>
    %97 = arith.addf %92, %96 : vector<8x256xf32>
    %98 = arith.addf %40, %87 : vector<8x256xf32>
    %99 = vector.broadcast %46 : vector<8x1xf32> to vector<8x256xf32>
    %100 = arith.addf %98, %99 : vector<8x256xf32>
    %101 = math.tanh %100 : vector<8x256xf32>
    %102 = arith.addf %97, %101 : vector<8x256xf32>
    %103 = arith.addf %36, %87 : vector<8x256xf32>
    %104 = vector.broadcast %48 : vector<8x1xf32> to vector<8x256xf32>
    %105 = arith.addf %103, %104 : vector<8x256xf32>
    %106 = math.tanh %105 : vector<8x256xf32>
    %107 = arith.addf %102, %106 : vector<8x256xf32>
    %108 = arith.addf %38, %87 : vector<8x256xf32>
    %109 = vector.broadcast %50 : vector<8x1xf32> to vector<8x256xf32>
    %110 = arith.addf %108, %109 : vector<8x256xf32>
    %111 = math.tanh %110 : vector<8x256xf32>
    %112 = arith.addf %107, %111 : vector<8x256xf32>
    %113 = arith.addf %40, %87 : vector<8x256xf32>
    %114 = vector.broadcast %52 : vector<8x1xf32> to vector<8x256xf32>
    %115 = arith.addf %113, %114 : vector<8x256xf32>
    %116 = math.tanh %115 : vector<8x256xf32>
    %117 = arith.addf %112, %116 : vector<8x256xf32>
    %c2_62 = arith.constant 2 : index
    %c0_63 = arith.constant 0 : index
    %c0_64 = arith.constant 0 : index
    %118 = vector.load %arg6[%c2_62, %c0_63, %c0_64] : memref<4x8x256xf32, #tpu.memory_space<vmem>>, vector<1x8x256xf32>
    %119 = vector.shape_cast %118 : vector<1x8x256xf32> to vector<8x256xf32>
    %120 = arith.addf %36, %119 : vector<8x256xf32>
    %121 = vector.broadcast %42 : vector<8x1xf32> to vector<8x256xf32>
    %122 = arith.addf %120, %121 : vector<8x256xf32>
    %123 = math.tanh %122 : vector<8x256xf32>
    %124 = arith.addf %117, %123 : vector<8x256xf32>
    %125 = arith.addf %38, %119 : vector<8x256xf32>
    %126 = vector.broadcast %44 : vector<8x1xf32> to vector<8x256xf32>
    %127 = arith.addf %125, %126 : vector<8x256xf32>
    %128 = math.tanh %127 : vector<8x256xf32>
    %129 = arith.addf %124, %128 : vector<8x256xf32>
    %130 = arith.addf %40, %119 : vector<8x256xf32>
    %131 = vector.broadcast %46 : vector<8x1xf32> to vector<8x256xf32>
    %132 = arith.addf %130, %131 : vector<8x256xf32>
    %133 = math.tanh %132 : vector<8x256xf32>
    %134 = arith.addf %129, %133 : vector<8x256xf32>
    %135 = arith.addf %36, %119 : vector<8x256xf32>
    %136 = vector.broadcast %48 : vector<8x1xf32> to vector<8x256xf32>
    %137 = arith.addf %135, %136 : vector<8x256xf32>
    %138 = math.tanh %137 : vector<8x256xf32>
    %139 = arith.addf %134, %138 : vector<8x256xf32>
    %140 = arith.addf %38, %119 : vector<8x256xf32>
    %141 = vector.broadcast %50 : vector<8x1xf32> to vector<8x256xf32>
    %142 = arith.addf %140, %141 : vector<8x256xf32>
    %143 = math.tanh %142 : vector<8x256xf32>
    %144 = arith.addf %139, %143 : vector<8x256xf32>
    %145 = arith.addf %40, %119 : vector<8x256xf32>
    %146 = vector.broadcast %52 : vector<8x1xf32> to vector<8x256xf32>
    %147 = arith.addf %145, %146 : vector<8x256xf32>
    %148 = math.tanh %147 : vector<8x256xf32>
    %149 = arith.addf %144, %148 : vector<8x256xf32>
    %c3_65 = arith.constant 3 : index
    %c0_66 = arith.constant 0 : index
    %c0_67 = arith.constant 0 : index
    %150 = vector.load %arg6[%c3_65, %c0_66, %c0_67] : memref<4x8x256xf32, #tpu.memory_space<vmem>>, vector<1x8x256xf32>
    %151 = vector.shape_cast %150 : vector<1x8x256xf32> to vector<8x256xf32>
    %152 = arith.addf %36, %151 : vector<8x256xf32>
    %153 = vector.broadcast %42 : vector<8x1xf32> to vector<8x256xf32>
    %154 = arith.addf %152, %153 : vector<8x256xf32>
    %155 = math.tanh %154 : vector<8x256xf32>
    %156 = arith.addf %149, %155 : vector<8x256xf32>
    %157 = arith.addf %38, %151 : vector<8x256xf32>
    %158 = vector.broadcast %44 : vector<8x1xf32> to vector<8x256xf32>
    %159 = arith.addf %157, %158 : vector<8x256xf32>
    %160 = math.tanh %159 : vector<8x256xf32>
    %161 = arith.addf %156, %160 : vector<8x256xf32>
    %162 = arith.addf %40, %151 : vector<8x256xf32>
    %163 = vector.broadcast %46 : vector<8x1xf32> to vector<8x256xf32>
    %164 = arith.addf %162, %163 : vector<8x256xf32>
    %165 = math.tanh %164 : vector<8x256xf32>
    %166 = arith.addf %161, %165 : vector<8x256xf32>
    %167 = arith.addf %36, %151 : vector<8x256xf32>
    %168 = vector.broadcast %48 : vector<8x1xf32> to vector<8x256xf32>
    %169 = arith.addf %167, %168 : vector<8x256xf32>
    %170 = math.tanh %169 : vector<8x256xf32>
    %171 = arith.addf %166, %170 : vector<8x256xf32>
    %172 = arith.addf %38, %151 : vector<8x256xf32>
    %173 = vector.broadcast %50 : vector<8x1xf32> to vector<8x256xf32>
    %174 = arith.addf %172, %173 : vector<8x256xf32>
    %175 = math.tanh %174 : vector<8x256xf32>
    %176 = arith.addf %171, %175 : vector<8x256xf32>
    %177 = arith.addf %40, %151 : vector<8x256xf32>
    %178 = vector.broadcast %52 : vector<8x1xf32> to vector<8x256xf32>
    %179 = arith.addf %177, %178 : vector<8x256xf32>
    %180 = math.tanh %179 : vector<8x256xf32>
    %181 = arith.addf %176, %180 : vector<8x256xf32>
    %cst_68 = arith.constant 0.020833334 : f32
    %182 = vector.broadcast %cst_68 : f32 to vector<8x256xf32>
    %183 = arith.mulf %182, %181 : vector<8x256xf32>
    %cst_69 = arith.constant 5.000000e-01 : f32
    %184 = vector.broadcast %cst_69 : f32 to vector<8x256xf32>
    %185 = arith.addf %184, %183 : vector<8x256xf32>
    %c0_70 = arith.constant 0 : index
    %c0_71 = arith.constant 0 : index
    %186 = vector.load %arg5[%c0_70, %c0_71] : memref<8x256xf32, #tpu.memory_space<vmem>>, vector<8x256xf32>
    tpu.vector_store %arg5[%c0_70, %c0_71], %185 {strides = array<i32>} : memref<8x256xf32, #tpu.memory_space<vmem>>, vector<8x256xf32>,
    return
  }
  func.func @transform_0(%arg0: i32) -> (i32, i32) {
    %c0_i32 = arith.constant 0 : i32
    %c0_i32_0 = arith.constant 0 : i32
    return %c0_i32, %arg0 : i32, i32
  }
  func.func @transform_1(%arg0: i32) -> (i32, i32) {
    %c0_i32 = arith.constant 0 : i32
    %c0_i32_0 = arith.constant 0 : i32
    %c0_i32_1 = arith.constant 0 : i32
    return %c0_i32, %c0_i32_0 : i32, i32
  }
  func.func @transform_2(%arg0: i32) -> (i32, i32, i32) {
    %c0_i32 = arith.constant 0 : i32
    %c0_i32_0 = arith.constant 0 : i32
    %c0_i32_1 = arith.constant 0 : i32
    return %c0_i32, %c0_i32_0, %arg0 : i32, i32, i32
  }
  func.func @transform_3(%arg0: i32) -> (i32, i32, i32) {
    %c0_i32 = arith.constant 0 : i32
    %c0_i32_0 = arith.constant 0 : i32
    %c0_i32_1 = arith.constant 0 : i32
    %c0_i32_2 = arith.constant 0 : i32
    return %c0_i32, %c0_i32_0, %c0_i32_1 : i32, i32, i32
  }
  func.func @transform_4(%arg0: i32) -> (i32, i32) {
    %c0_i32 = arith.constant 0 : i32
    %c0_i32_0 = arith.constant 0 : i32
    return %c0_i32, %arg0 : i32, i32
  }
}

</mosaic_0001>

<bundles_post_ra>
// kernel: tpu_custom_call.1
= control target key start
LH: loop header
LB: loop body
LE: loop exit
PB: predicated region body
PF: predicated region fallthrough
CT: control target
= control target key end

     0   :  { %9 = vsyncpa [#allocation4], 0  ;;  %s729_s0 = inlined_call_operand.vmem [shape: f32[8,256], index: 0, kind: input, shape index: {}]   ;;  %s730_s1 = inlined_call_operand.hbm [shape: f32[8,8], index: 1, kind: input, shape index: {}]   ;;  %s731_s2 = inlined_call_operand.vmem [shape: f32[4,4,256], index: 2, kind: input, shape index: {}]   ;;  %s732_s3 = inlined_call_operand.vmem [shape: f32[6,8,1], index: 3, kind: input, shape index: {}]   ;;  %s733_s4 = inlined_call_operand.hbm [shape: f32[8,256], index: 4, kind: output, shape index: {}]  }
   0x1   :  { %10 = vsyncpa [#allocation5], 0  ;;  %s18_s17 = sshll.u32 %s730_s1, 4  ;;  %s563_s18 = smov [#allocation3]   ;;  %s19_s17 = int_to_ptr.hbm [resolvable:$true] %s18_s17 }
   0x2   :  { %s20_s19 = sshll.u32 %s563_s18, 4  ;;  %s21_s19 = int_to_ptr.vmem [resolvable:$true] %s20_s19 }
   0x3   :  { %23 = dma.hbm_to_vmem [thread:$0]  %s19_s17, 128, %s21_s19, [#allocation4]  }
   0x4   :  { %559 = dma.done.wait [#allocation4], 128  }
   0x5   :  { %560 = vsyncadd [#allocation4], 4294967168  ;;  %v564_v0 = vmov 0   ;;  %vm35_vm0 = vcmask 64512   ;;  %v159_v1 = vld [vmem:[%s732_s3] sm:$0xff]  ;;  %v34_v3 = vld [vmem:[%s729_s0 + $0x8] sm:$0xff] }
   0x6   :  { %412 = vset.pattern.permute.xlu0 %v564_v0  ;;  %413 = vset.pattern.permute.xlu1 %v564_v0  ;;  %v33_v2 = vld [vmem:[%s729_s0] sm:$0xff]  ;;  %v32_v4 = vld [vmem:[#allocation3] sm:$0xff]  ;;  %v405_v5 = vld [vmem:[%s732_s3 + $0x10] sm:$0xff]  ;;  %s389_s18 = sshll.u32 %s733_s4, 4  ;;  %s390_s18 = int_to_ptr.hbm [resolvable:$true] %s389_s18 }
   0x7   :  { %414 = vset.pattern.permute.xlu2 %v564_v0  ;;  %176 = vperm.xlu0 %412, %v159_v1   ;;  %v407_v6 = vld [vmem:[%s732_s3 + $0x20] sm:$0xff]  ;;  %v404_v7 = vld [vmem:[%s732_s3 + $0x8] sm:$0xff]  ;;  %v406_v8 = vld [vmem:[%s732_s3 + $0x18] sm:$0xff] }
   0x8   :  { %54 = vmatpush.msra.mxu0 %v33_v2  ;;  %74 = vmatpush.msra.mxu1 %v34_v3  ;;  %v408_v9 = vld [vmem:[%s732_s3 + $0x28] sm:$0xff]  ;;  %v79_v10 = vld [vmem:[%s731_s2] sm:$0xff]  ;;  %v402_v18 = vld [vmem:[%s731_s2 + $0x10] sm:$0xff] }
   0x9   :  { %399 = vmatmul.msk.f32.vlgmr.msra.gmra.mxu0 %vm35_vm0, %v32_v4  ;;  %400 = vmatmul.msk.f32.vlgmr.msra.gmra.mxu1 %vm35_vm0, %v32_v4  ;;  %81 = vst [vmem:[#allocation1] ss:$2 sm:$0xff] %v79_v10  ;;  %v401_v13 = vld [vmem:[%s731_s2 + $0x8] sm:$0xff]  ;;  %v403_v23 = vld [vmem:[%s731_s2 + $0x18] sm:$0xff]  ;;  %s565_s2 = smov [#allocation6]  }
   0xa   :  { %202 = vperm.xlu1 %413, %v405_v5   ;;  %224 = vperm.xlu2 %414, %v407_v6   ;;  %s387_s15 = sshll.u32 %s565_s2, 4  ;;  %s388_s15 = int_to_ptr.vmem [resolvable:$true] %s387_s15 }
   0xf   :  { %189 = vperm.xlu0 %412, %v404_v7  }
  0x10   :  { %v82_v11 = vld.sshfl [vmem:[#allocation1] sm:$0xff pattern:$0x75316420]  ;;  %v83_v12 = vld.sshfl [vmem:[#allocation1 + $0x8] sm:$0xff pattern:$0x75316420] }
  0x11   :  { %86 = vst [vmem:[#allocation2 + $0x30] sm:$0xf] %v82_v11 }
  0x12   :  { %213 = vperm.xlu1 %413, %v406_v8   ;;  %235 = vperm.xlu2 %414, %v408_v9   ;;  %89 = vst [vmem:[#allocation1 + $0x1] ss:$2 sm:$0xff] %v79_v10 }
  0x13   :  { %87 = vst [vmem:[#allocation2] sm:$0xf] %v83_v12 }
  0x19   :  { %v90_v14 = vld.sshfl [vmem:[#allocation1] sm:$0xff pattern:$0x75316420]  ;;  %v91_v15 = vld.sshfl [vmem:[#allocation1 + $0x8] sm:$0xff pattern:$0x75316420] }
  0x1a   :  { %94 = vst [vmem:[#allocation2 + $0x30] sm:$0xf0] %v90_v14 }
  0x1b   :  { %99 = vst [vmem:[#allocation1] ss:$2 sm:$0xff] %v401_v13 }
  0x1c   :  { %95 = vst [vmem:[#allocation2] sm:$0xf0] %v91_v15 }
  0x21   :  { %v170_v35 = vld [vmem:[#allocation2 + $0x30] sm:$0xff] }
  0x22   :  { %v100_v16 = vld.sshfl [vmem:[#allocation1] sm:$0xff pattern:$0x75316420]  ;;  %v101_v17 = vld.sshfl [vmem:[#allocation1 + $0x8] sm:$0xff pattern:$0x75316420] }
  0x23   :  { %105 = vst [vmem:[#allocation2 + $0x18] sm:$0xf] %v100_v16  ;;  %v171_v38 = vld [vmem:[#allocation2] sm:$0xff] }
  0x24   :  { %108 = vst [vmem:[#allocation1 + $0x1] ss:$2 sm:$0xff] %v401_v13 }
  0x25   :  { %106 = vst [vmem:[#allocation2 + $0x10] sm:$0xf] %v101_v17 }
  0x2b   :  { %v109_v19 = vld.sshfl [vmem:[#allocation1] sm:$0xff pattern:$0x75316420]  ;;  %v110_v20 = vld.sshfl [vmem:[#allocation1 + $0x8] sm:$0xff pattern:$0x75316420] }
  0x2c   :  { %113 = vst [vmem:[#allocation2 + $0x18] sm:$0xf0] %v109_v19 }
  0x2d   :  { %118 = vst [vmem:[#allocation1] ss:$2 sm:$0xff] %v402_v18 }
  0x2e   :  { %114 = vst [vmem:[#allocation2 + $0x10] sm:$0xf0] %v110_v20 }
  0x33   :  { %v244_v0 = vld [vmem:[#allocation2 + $0x18] sm:$0xff] }
  0x34   :  { %v119_v21 = vld.sshfl [vmem:[#allocation1] sm:$0xff pattern:$0x75316420]  ;;  %v120_v22 = vld.sshfl [vmem:[#allocation1 + $0x8] sm:$0xff pattern:$0x75316420] }
  0x35   :  { %124 = vst [vmem:[#allocation2 + $0x8] sm:$0xf] %v119_v21  ;;  %v245_v3 = vld [vmem:[#allocation2 + $0x10] sm:$0xff] }
  0x36   :  { %127 = vst [vmem:[#allocation1 + $0x1] ss:$2 sm:$0xff] %v402_v18 }
  0x37   :  { %125 = vst [vmem:[#allocation2 + $0x20] sm:$0xf] %v120_v22 }
  0x3d   :  { %v128_v24 = vld.sshfl [vmem:[#allocation1] sm:$0xff pattern:$0x75316420]  ;;  %v129_v25 = vld.sshfl [vmem:[#allocation1 + $0x8] sm:$0xff pattern:$0x75316420] }
  0x3e   :  { %132 = vst [vmem:[#allocation2 + $0x8] sm:$0xf0] %v128_v24 }
  0x3f   :  { %137 = vst [vmem:[#allocation1] ss:$2 sm:$0xff] %v403_v23 }
  0x40   :  { %133 = vst [vmem:[#allocation2 + $0x20] sm:$0xf0] %v129_v25 }
  0x46   :  { %v138_v26 = vld.sshfl [vmem:[#allocation1] sm:$0xff pattern:$0x75316420]  ;;  %v139_v27 = vld.sshfl [vmem:[#allocation1 + $0x8] sm:$0xff pattern:$0x75316420] }
  0x47   :  { %143 = vst [vmem:[#allocation2 + $0x28] sm:$0xf] %v138_v26 }
  0x48   :  { %146 = vst [vmem:[#allocation1 + $0x1] ss:$2 sm:$0xff] %v403_v23 }
  0x49   :  { %144 = vst [vmem:[#allocation2 + $0x38] sm:$0xf] %v139_v27 }
  0x4f   :  { %v147_v28 = vld.sshfl [vmem:[#allocation1] sm:$0xff pattern:$0x75316420]  ;;  %v148_v29 = vld.sshfl [vmem:[#allocation1 + $0x8] sm:$0xff pattern:$0x75316420] }
  0x50   :  { %151 = vst [vmem:[#allocation2 + $0x28] sm:$0xf0] %v147_v28 }
  0x51   :  { %152 = vst [vmem:[#allocation2 + $0x38] sm:$0xf0] %v148_v29 }
  0x64   :  { %v658_v53 = vpop.permute.xlu2 %224 }
  0x6c   :  { %v668_v5 = vpop.permute.xlu2 %235 }
  0x79   :  { %v630_v31 = vpop.permute.xlu0 %176 }
  0x7c   :  { %v649_v46 = vpop.permute.xlu1 %202 }
  0x81   :  { %v644_v43 = vpop.permute.xlu0 %189 }
  0x84   :  { %v662_v58 = vpop.permute.xlu1 %213 }
  0x86   :  { %v56_v30 = vpop.f32.mrf.mxu0  ;;  %v76_v32 = vpop.f32.mrf.mxu1 }
  0x87   :  { %v632_v33 = vmul.f32 0.5, %v56_v30  ;;  %v634_v34 = vmul.f32 0.45, %v56_v30  ;;  %v636_v36 = vmul.f32 0.5, %v76_v32  ;;  %v638_v37 = vmul.f32 0.45, %v76_v32 }
  0x88   :  { %v646_v44 = vmul.f32 0.55, %v56_v30  ;;  %v652_v48 = vmul.f32 0.55, %v76_v32  ;;  %v288_v30 = vld [vmem:[#allocation2 + $0x8] sm:$0xff] }
  0x89   :  { %v172_v39 = vadd.f32 %v170_v35, %v632_v33  ;;  %v185_v40 = vadd.f32 %v170_v35, %v634_v34  ;;  %v173_v41 = vadd.f32 %v171_v38, %v636_v36  ;;  %v186_v42 = vadd.f32 %v171_v38, %v638_v37 }
  0x8a   :  { %v198_v51 = vadd.f32 %v170_v35, %v646_v44  ;;  %v199_v52 = vadd.f32 %v171_v38, %v652_v48  ;;  %v246_v7 = vadd.f32 %v244_v0, %v632_v33  ;;  %v247_v10 = vadd.f32 %v245_v3, %v636_v36 }
  0x8b   :  { %v179_v45 = vadd.f32 %v630_v31, %v172_v39  ;;  %v192_v47 = vadd.f32 %v644_v43, %v185_v40  ;;  %v180_v49 = vadd.f32 %v630_v31, %v173_v41  ;;  %v193_v50 = vadd.f32 %v644_v43, %v186_v42 }
  0x8c   :  { %v205_v54 = vadd.f32 %v649_v46, %v198_v51  ;;  %v206_v55 = vadd.f32 %v649_v46, %v199_v52  ;;  %v216_v60 = vadd.f32 %v662_v58, %v172_v39  ;;  %v217_v62 = vadd.f32 %v662_v58, %v173_v41  ;;  %v289_v39 = vld [vmem:[#allocation2 + $0x20] sm:$0xff] }
  0x8d   :  { %415 = vtanh.f32 %v179_v45  ;;  %v227_v1 = vadd.f32 %v658_v53, %v185_v40  ;;  %v228_v4 = vadd.f32 %v658_v53, %v186_v42  ;;  %v254_v11 = vadd.f32 %v244_v0, %v634_v34 }
  0x8e   :  { %417 = vtanh.f32 %v192_v47  ;;  %v238_v13 = vadd.f32 %v668_v5, %v198_v51  ;;  %v255_v14 = vadd.f32 %v245_v3, %v638_v37  ;;  %v239_v15 = vadd.f32 %v668_v5, %v199_v52 }
  0x8f   :  { %419 = vtanh.f32 %v180_v49  ;;  %v248_v17 = vadd.f32 %v246_v7, %v630_v31  ;;  %v262_v18 = vadd.f32 %v244_v0, %v646_v44  ;;  %v249_v21 = vadd.f32 %v247_v10, %v630_v31 }
  0x90   :  { %421 = vtanh.f32 %v193_v50  ;;  %v263_v22 = vadd.f32 %v245_v3, %v652_v48  ;;  %v256_v23 = vadd.f32 %v254_v11, %v644_v43  ;;  %v257_v25 = vadd.f32 %v255_v14, %v644_v43 }
  0x91   :  { %423 = vtanh.f32 %v205_v54  ;;  %v264_v27 = vadd.f32 %v262_v18, %v649_v46  ;;  %v270_v35 = vadd.f32 %v246_v7, %v662_v58  ;;  %v271_v40 = vadd.f32 %v247_v10, %v662_v58 }
  0x92   :  { %425 = vtanh.f32 %v206_v55  ;;  %v265_v32 = vadd.f32 %v263_v22, %v649_v46  ;;  %v276_v42 = vadd.f32 %v254_v11, %v658_v53  ;;  %v290_v45 = vadd.f32 %v288_v30, %v632_v33 }
  0x93   :  { %v416_v56 = vpop.eup %415  ;;  %427 = vtanh.f32 %v216_v60  ;;  %v277_v49 = vadd.f32 %v255_v14, %v658_v53  ;;  %v291_v50 = vadd.f32 %v289_v39, %v636_v36  ;;  %v298_v54 = vadd.f32 %v288_v30, %v634_v34 }
  0x94   :  { %v418_v57 = vpop.eup %417  ;;  %429 = vtanh.f32 %v217_v62  ;;  %v306_v0 = vadd.f32 %v288_v30, %v646_v44 }
  0x95   :  { %v420_v59 = vpop.eup %419  ;;  %v196_v63 = vadd.f32 %v418_v57, %v416_v56  ;;  %431 = vtanh.f32 %v227_v1  ;;  %v282_v56 = vadd.f32 %v262_v18, %v668_v5  ;;  %v293_v3 = vadd.f32 %v291_v50, %v630_v31 }
  0x96   :  { %v422_v61 = vpop.eup %421  ;;  %433 = vtanh.f32 %v228_v4  ;;  %v307_v4 = vadd.f32 %v289_v39, %v652_v48  ;;  %v308_v14 = vadd.f32 %v306_v0, %v649_v46 }
  0x97   :  { %v197_v2 = vadd.f32 %v422_v61, %v420_v59  ;;  %v424_v6 = vpop.eup %423  ;;  %435 = vtanh.f32 %v238_v13  ;;  %v299_v59 = vadd.f32 %v289_v39, %v638_v37  ;;  %v283_v61 = vadd.f32 %v263_v22, %v668_v5  ;;  %v333_v22 = vld [vmem:[#allocation2 + $0x38] sm:$0xff] }
  0x98   :  { %v426_v8 = vpop.eup %425  ;;  %v209_v9 = vadd.f32 %v424_v6, %v196_v63  ;;  %437 = vtanh.f32 %v239_v15  ;;  %v292_v63 = vadd.f32 %v290_v45, %v630_v31  ;;  %v309_v18 = vadd.f32 %v307_v4, %v649_v46 }
  0x99   :  { %v210_v12 = vadd.f32 %v426_v8, %v197_v2  ;;  %v428_v16 = vpop.eup %427  ;;  %439 = vtanh.f32 %v248_v17  ;;  %v300_v8 = vadd.f32 %v298_v54, %v644_v43  ;;  %v301_v11 = vadd.f32 %v299_v59, %v644_v43  ;;  %v332_v17 = vld [vmem:[#allocation2 + $0x28] sm:$0xff] }
  0x9a   :  { %v430_v19 = vpop.eup %429  ;;  %v220_v20 = vadd.f32 %v428_v16, %v209_v9  ;;  %441 = vtanh.f32 %v249_v21  ;;  %v314_v21 = vadd.f32 %v290_v45, %v662_v58  ;;  %v326_v45 = vadd.f32 %v306_v0, %v668_v5 }
  0x9b   :  { %v221_v24 = vadd.f32 %v430_v19, %v210_v12  ;;  %v432_v26 = vpop.eup %431  ;;  %443 = vtanh.f32 %v256_v23 }
  0x9c   :  { %v434_v28 = vpop.eup %433  ;;  %v231_v29 = vadd.f32 %v432_v26, %v220_v20  ;;  %445 = vtanh.f32 %v257_v25  ;;  %v315_v25 = vadd.f32 %v291_v50, %v662_v58  ;;  %v327_v50 = vadd.f32 %v307_v4, %v668_v5 }
  0x9d   :  { %v232_v38 = vadd.f32 %v434_v28, %v221_v24  ;;  %v436_v41 = vpop.eup %435  ;;  %447 = vtanh.f32 %v264_v27  ;;  %v320_v28 = vadd.f32 %v298_v54, %v658_v53 }
  0x9e   :  { %v438_v47 = vpop.eup %437  ;;  %449 = vtanh.f32 %v265_v32  ;;  %v242_v51 = vadd.f32 %v436_v41, %v231_v29  ;;  %v334_v29 = vadd.f32 %v332_v17, %v632_v33  ;;  %v342_v41 = vadd.f32 %v332_v17, %v634_v34 }
  0x9f   :  { %v440_v52 = vpop.eup %439  ;;  %451 = vtanh.f32 %v270_v35  ;;  %v243_v55 = vadd.f32 %v438_v47, %v232_v38  ;;  %v321_v35 = vadd.f32 %v299_v59, %v658_v53  ;;  %v335_v38 = vadd.f32 %v333_v22, %v636_v36 }
  0xa0   :  { %v442_v57 = vpop.eup %441  ;;  %453 = vtanh.f32 %v271_v40  ;;  %v252_v60 = vadd.f32 %v440_v52, %v242_v51  ;;  %v336_v52 = vadd.f32 %v334_v29, %v630_v31  ;;  %v350_v36 = vadd.f32 %v332_v17, %v646_v44 }
  0xa1   :  { %v444_v62 = vpop.eup %443  ;;  %455 = vtanh.f32 %v276_v42  ;;  %v253_v1 = vadd.f32 %v442_v57, %v243_v55  ;;  %v337_v34 = vadd.f32 %v335_v38, %v630_v31  ;;  %v358_v4 = vadd.f32 %v334_v29, %v662_v58 }
  0xa2   :  { %v446_v2 = vpop.eup %445  ;;  %457 = vtanh.f32 %v277_v49  ;;  %v260_v6 = vadd.f32 %v444_v62, %v252_v60  ;;  %v343_v49 = vadd.f32 %v333_v22, %v638_v37  ;;  %v344_v37 = vadd.f32 %v342_v41, %v644_v43 }
  0xa3   :  { %v448_v7 = vpop.eup %447  ;;  %v261_v9 = vadd.f32 %v446_v2, %v253_v1  ;;  %459 = vtanh.f32 %v282_v56  ;;  %v351_v56 = vadd.f32 %v333_v22, %v652_v48  ;;  %v352_v44 = vadd.f32 %v350_v36, %v649_v46 }
  0xa4   :  { %v450_v10 = vpop.eup %449  ;;  %v268_v12 = vadd.f32 %v448_v7, %v260_v6  ;;  %461 = vtanh.f32 %v283_v61  ;;  %v345_v62 = vadd.f32 %v343_v49, %v644_v43  ;;  %v359_v43 = vadd.f32 %v335_v38, %v662_v58 }
  0xa5   :  { %v452_v13 = vpop.eup %451  ;;  %463 = vtanh.f32 %v292_v63  ;;  %v269_v15 = vadd.f32 %v450_v10, %v261_v9  ;;  %v353_v31 = vadd.f32 %v351_v56, %v649_v46  ;;  %v364_v10 = vadd.f32 %v342_v41, %v658_v53 }
  0xa6   :  { %v454_v16 = vpop.eup %453  ;;  %465 = vtanh.f32 %v293_v3  ;;  %v274_v19 = vadd.f32 %v452_v13, %v268_v12  ;;  %v365_v46 = vadd.f32 %v343_v49, %v658_v53  ;;  %v371_v58 = vadd.f32 %v351_v56, %v668_v5 }
  0xa7   :  { %v456_v20 = vpop.eup %455  ;;  %467 = vtanh.f32 %v300_v8  ;;  %v275_v23 = vadd.f32 %v454_v16, %v269_v15  ;;  %v370_v15 = vadd.f32 %v350_v36, %v668_v5 }
  0xa8   :  { %v458_v24 = vpop.eup %457  ;;  %469 = vtanh.f32 %v301_v11  ;;  %v280_v26 = vadd.f32 %v456_v20, %v274_v19 }
  0xa9   :  { %v460_v27 = vpop.eup %459  ;;  %471 = vtanh.f32 %v308_v14  ;;  %v281_v30 = vadd.f32 %v458_v24, %v275_v23 }
  0xaa   :  { %v462_v32 = vpop.eup %461  ;;  %473 = vtanh.f32 %v309_v18  ;;  %v286_v39 = vadd.f32 %v460_v27, %v280_v26 }
  0xab   :  { %v464_v40 = vpop.eup %463  ;;  %475 = vtanh.f32 %v314_v21  ;;  %v287_v42 = vadd.f32 %v462_v32, %v281_v30 }
  0xac   :  { %v466_v47 = vpop.eup %465  ;;  %477 = vtanh.f32 %v315_v25  ;;  %v296_v33 = vadd.f32 %v464_v40, %v286_v39 }
  0xad   :  { %v468_v51 = vpop.eup %467  ;;  %479 = vtanh.f32 %v320_v28  ;;  %v297_v54 = vadd.f32 %v466_v47, %v287_v42 }
  0xae   :  { %v470_v55 = vpop.eup %469  ;;  %481 = vtanh.f32 %v321_v35  ;;  %v304_v57 = vadd.f32 %v468_v51, %v296_v33 }
  0xaf   :  { %v472_v59 = vpop.eup %471  ;;  %v305_v60 = vadd.f32 %v470_v55, %v297_v54  ;;  %483 = vtanh.f32 %v326_v45 }
  0xb0   :  { %v474_v61 = vpop.eup %473  ;;  %485 = vtanh.f32 %v327_v50  ;;  %v312_v63 = vadd.f32 %v472_v59, %v304_v57 }
  0xb1   :  { %v476_v0 = vpop.eup %475  ;;  %487 = vtanh.f32 %v336_v52  ;;  %v313_v1 = vadd.f32 %v474_v61, %v305_v60 }
  0xb2   :  { %v478_v2 = vpop.eup %477  ;;  %489 = vtanh.f32 %v337_v34  ;;  %v318_v48 = vadd.f32 %v476_v0, %v312_v63 }
  0xb3   :  { %v480_v3 = vpop.eup %479  ;;  %491 = vtanh.f32 %v344_v37  ;;  %v319_v6 = vadd.f32 %v478_v2, %v313_v1 }
  0xb4   :  { %v482_v7 = vpop.eup %481  ;;  %493 = vtanh.f32 %v345_v62  ;;  %v324_v8 = vadd.f32 %v480_v3, %v318_v48 }
  0xb5   :  { %v484_v9 = vpop.eup %483  ;;  %495 = vtanh.f32 %v352_v44  ;;  %v325_v11 = vadd.f32 %v482_v7, %v319_v6 }
  0xb6   :  { %v486_v12 = vpop.eup %485  ;;  %497 = vtanh.f32 %v353_v31  ;;  %v330_v13 = vadd.f32 %v484_v9, %v324_v8 }
  0xb7   :  { %v488_v14 = vpop.eup %487  ;;  %499 = vtanh.f32 %v358_v4  ;;  %v331_v16 = vadd.f32 %v486_v12, %v325_v11 }
  0xb8   :  { %v490_v17 = vpop.eup %489  ;;  %501 = vtanh.f32 %v359_v43  ;;  %v340_v18 = vadd.f32 %v488_v14, %v330_v13 }
  0xb9   :  { %v492_v19 = vpop.eup %491  ;;  %503 = vtanh.f32 %v364_v10  ;;  %v341_v20 = vadd.f32 %v490_v17, %v331_v16 }
  0xba   :  { %v494_v21 = vpop.eup %493  ;;  %505 = vtanh.f32 %v365_v46  ;;  %v348_v22 = vadd.f32 %v492_v19, %v340_v18 }
  0xbb   :  { %v496_v23 = vpop.eup %495  ;;  %v349_v24 = vadd.f32 %v494_v21, %v341_v20  ;;  %507 = vtanh.f32 %v370_v15 }
  0xbc   :  { %v498_v53 = vpop.eup %497  ;;  %v356_v25 = vadd.f32 %v496_v23, %v348_v22  ;;  %509 = vtanh.f32 %v371_v58 }
  0xbd   :  { %v500_v26 = vpop.eup %499  ;;  %v357_v27 = vadd.f32 %v498_v53, %v349_v24 }
  0xbe   :  { %v502_v28 = vpop.eup %501  ;;  %v362_v29 = vadd.f32 %v500_v26, %v356_v25 }
  0xbf   :  { %v504_v30 = vpop.eup %503  ;;  %v363_v32 = vadd.f32 %v502_v28, %v357_v27 }
  0xc0   :  { %v506_v5 = vpop.eup %505  ;;  %v368_v35 = vadd.f32 %v504_v30, %v362_v29 }
  0xc1   :  { %v508_v38 = vpop.eup %507  ;;  %v369_v39 = vadd.f32 %v506_v5, %v363_v32 }
  0xc2   :  { %v510_v40 = vpop.eup %509  ;;  %v374_v41 = vadd.f32 %v508_v38, %v368_v35 }
  0xc3   :  { %v375_v42 = vadd.f32 %v510_v40, %v369_v39 }
  0xc4   :  { %v376_v45 = vmul.f32 0.020833334, %v374_v41 }
  0xc5   :  { %v377_v47 = vmul.f32 0.020833334, %v375_v42 }
  0xc6   :  { %v378_v49 = vadd.f32 0.5, %v376_v45 }
  0xc7   :  { %v379_v33 = vadd.f32 0.5, %v377_v47 }
  0xc8   :  { %380 = vst [vmem:[#allocation6] sm:$0xff] %v378_v49 }
  0xc9   :  { %381 = vst [vmem:[#allocation6 + $0x8] sm:$0xff] %v379_v33 }
  0xca   :  { %392 = dma.vmem_to_hbm [thread:$0]  %s388_s15, 256, %s390_s18, [#allocation5]  }
  0xcb   :  { %561 = dma.done.wait [#allocation5], 256  }
  0xcc   :  { %562 = vsyncadd [#allocation5], 4294967040 }
  0xcd   :  { %397 = vsyncpa [#allocation4], 1 }
  0xce   :  { %398 = vsyncpa [#allocation5], 1 }

</bundles_post_ra>
